<compile_context>
chip_gen: v7x
topology: tpu7x:2x2x1
jax: 0.10.0
libtpu: 0.0.40
codegen_flags: <defaults>
</compile_context>

<pallas_src>
import math

import jax
import jax.numpy as jnp
from jax.experimental import pallas as pl
from jax.experimental.pallas import tpu as pltpu

# cfg.cen_loss_weight — deterministic, synthetic config value
CEN_LOSS_WEIGHT = 1.0

LANES = 128


def _num_tensorcores():
    """Shard count for the 'parallel' grid axis (= TensorCores per chip)."""
    try:
        kind = jax.devices()[0].device_kind.lower()
    except Exception:
        return 1
    if "v7" in kind or "7x" in kind:
        return 2          # v7x: 2 TensorCores per chip
    if "v4" in kind or "v5p" in kind:
        return 2          # megacore chips
    return 1              # v5e / v6e: single TensorCore


def _block_rows_and_vmem_limit():
    """Pick the streaming block size from available VMEM."""
    try:
        vmem = pltpu.get_tpu_info().vmem_capacity_bytes
    except Exception:
        vmem = 64 * 1024 * 1024
    if vmem >= 128 * 1024 * 1024:
        # v5e / v6e: 8 MiB per input buffer, 32 MiB of input buffers total.
        return 16384, 48 * 1024 * 1024
    # v7x (64 MiB per-TC VMEM): 4 MiB per input buffer, 16 MiB total.
    return 8192, 32 * 1024 * 1024


def _bce_sum_f32(x, y):
    """Numerically-stable BCE-with-logits sum (matches F.binary_cross_entropy_with_logits)."""
    x = x.astype(jnp.float32)
    y = y.astype(jnp.float32)
    return jnp.sum(jnp.maximum(x, 0.0) - x * y + jnp.log1p(jnp.exp(-jnp.abs(x))))


def _make_kernel(rows_valid, block_rows, nblocks, num_logical_steps):
    tail_rows = rows_valid - (nblocks - 1) * block_rows   # valid rows in last block
    needs_mask = tail_rows < block_rows                   # static
    has_overflow = num_logical_steps > nblocks            # static

    def kernel(pred_ref, tgt_ref, out_ref, acc_ref):
        s = pl.program_id(0)            # shard axis ("parallel")
        j = pl.program_id(1)            # reduction axis ("arbitrary")
        nj = pl.num_programs(1)
        b = s * nj + j                  # logical block index

        @pl.when(j == 0)
        def _():
            acc_ref[...] = jnp.zeros_like(acc_ref)

        def bce():
            x = pred_ref[...].astype(jnp.float32)
            y = tgt_ref[...].astype(jnp.float32)
            # loss = max(x, 0) - x*y + log1p(exp(-|x|))
            return jnp.maximum(x, 0.0) - x * y + jnp.log1p(jnp.exp(-jnp.abs(x)))

        if needs_mask:
            # Steady state: fully-valid interior blocks, no per-element masking.
            @pl.when(b < nblocks - 1)
            def _():
                acc_ref[...] += jnp.sum(bce(), axis=0, keepdims=True)

            # Last logical block: mask the uninitialized grid-tail rows only.
            @pl.when(b == nblocks - 1)
            def _():
                loss = bce()
                row_ids = jax.lax.broadcasted_iota(jnp.int32, loss.shape, 0)
                loss = jnp.where(row_ids < tail_rows, loss, 0.0)
                acc_ref[...] += jnp.sum(loss, axis=0, keepdims=True)
        elif has_overflow:
            # No partial block, but the trailing shard has clamped overflow
            # steps (b >= nblocks): skip their accumulation entirely.
            @pl.when(b < nblocks)
            def _():
                acc_ref[...] += jnp.sum(bce(), axis=0, keepdims=True)
        else:
            acc_ref[...] += jnp.sum(bce(), axis=0, keepdims=True)

        @pl.when(j == nj - 1)
        def _():
            out_ref[...] = acc_ref[...]     # lane-dense (1, 128) store

    return kernel


def centerness_loss(centerness_pred, centerness_target, weight=CEN_LOSS_WEIGHT):
    """weight * sum(BCE_with_logits(pred, target)) as a Pallas TPU kernel."""
    assert centerness_pred.shape == centerness_target.shape

    n = math.prod(centerness_pred.shape)
    if n == 0:
        return jnp.float32(0.0)

    # Flatten only (free for contiguous arrays); keep the input dtype (bf16
    # inputs stream at half the HBM bytes — the f32 cast happens in-kernel).
    pred = centerness_pred.reshape(-1)
    tgt = centerness_target.reshape(-1)

    n_main = (n // LANES) * LANES
    tail = jnp.float32(0.0)
    if n_main < n:
        # TODO(synk): non-128-aligned element counts pay one tiny plain-JAX tail
        # sum plus a prefix slice; typical (B, C, H, W) centerness maps are
        # 128-aligned and never hit this branch.
        tail = _bce_sum_f32(pred[n_main:], tgt[n_main:])
        if n_main == 0:
            return jnp.float32(weight) * tail
        pred = pred[:n_main]
        tgt = tgt[:n_main]

    rows = n_main // LANES
    pred2d = pred.reshape(rows, LANES)
    tgt2d = tgt.reshape(rows, LANES)

    max_block_rows, vmem_limit = _block_rows_and_vmem_limit()
    if rows < 8:
        block_rows = rows                                  # == full dim (legal)
    elif rows % 8 == 0:
        block_rows = min(max_block_rows, rows)             # multiple of 8
    else:
        block_rows = min(max_block_rows, (rows // 8) * 8)  # multiple of 8
    nblocks = pl.cdiv(rows, block_rows)

    num_shards = max(1, min(_num_tensorcores(), nblocks))
    steps = pl.cdiv(nblocks, num_shards)

    def in_map(s, j):
        # Clamp so the trailing shard's overflow steps re-address the last
        # valid block (same block index => no extra DMA; accumulation skipped
        # inside the kernel).
        return (jnp.minimum(s * steps + j, nblocks - 1), 0)

    partials = pl.pallas_call(
        _make_kernel(rows, block_rows, nblocks, num_shards * steps),
        out_shape=jax.ShapeDtypeStruct((num_shards, LANES), jnp.float32),
        grid_spec=pltpu.PrefetchScalarGridSpec(
            num_scalar_prefetch=0,
            grid=(num_shards, steps),
            in_specs=[
                pl.BlockSpec((block_rows, LANES), in_map),
                pl.BlockSpec((block_rows, LANES), in_map),
            ],
            out_specs=pl.BlockSpec((1, LANES), lambda s, j: (s, 0)),
            scratch_shapes=[pltpu.VMEM((1, LANES), jnp.float32)],
        ),
        compiler_params=pltpu.CompilerParams(
            dimension_semantics=("parallel", "arbitrary"),
            vmem_limit_bytes=vmem_limit,
        ),
    )(pred2d, tgt2d)

    # Tiny cross-lane + cross-shard reduction and weight scale in JAX.
    return jnp.float32(weight) * (jnp.sum(partials) + tail)


def _reference(pred, tgt, weight=CEN_LOSS_WEIGHT):
    return weight * _bce_sum_f32(pred, tgt)


if __name__ == "__main__":
    key = jax.random.PRNGKey(0)
    k1, k2 = jax.random.split(key)

    # centerness_pred: raw logits, centerness_target: values in [0, 1]
    shape = (2, 4, 16, 16)
    centerness_pred = jax.random.normal(k1, shape, dtype=jnp.float32) * 2.0
    centerness_target = jax.random.uniform(k2, shape, dtype=jnp.float32)

    out = centerness_loss(centerness_pred, centerness_target)
    out = jax.block_until_ready(out)

    ref = _reference(centerness_pred, centerness_target)
    assert jnp.allclose(out, ref, rtol=1e-5, atol=1e-4), (out, ref)

    print("KERNEL_OK")
</pallas_src>

<mosaic_0001>
module attributes {stable_mosaic.version = 11 : i64} {
  func.func @kernel(%arg0: i32, %arg1: i32, %arg2: memref<16x128xf32, #tpu.memory_space<vmem>>, %arg3: memref<16x128xf32, #tpu.memory_space<vmem>>, %arg4: memref<1x128xf32, #tpu.memory_space<vmem>>, %arg5: memref<1x128xf32, #tpu.memory_space<vmem>>) attributes {dimension_semantics = [#tpu.dimension_semantics<parallel>, #tpu.dimension_semantics<arbitrary>], iteration_bounds = array<i64: 1, 1>, scalar_prefetch = 0 : i64, scratch_operands = 1 : i64, tpu.core_type = #tpu.core_type<tc>, window_params = [{transform_indices = @transform_0, window_bounds = array<i64: 16, 128>}, {transform_indices = @transform_1, window_bounds = array<i64: 16, 128>}, {transform_indices = @transform_2, window_bounds = array<i64: 1, 128>}]} {
    %c0_i32 = arith.constant 0 : i32
    %0 = arith.cmpi eq, %arg1, %c0_i32 : i32
    %1 = arith.extui %0 : i1 to i32
    %c0_i32_0 = arith.constant 0 : i32
    %2 = arith.cmpi ne, %1, %c0_i32_0 : i32
    scf.if %2 {
      %cst_12 = arith.constant 0.000000e+00 : f32
      %23 = vector.broadcast %cst_12 : f32 to vector<1x128xf32>
      %c0_13 = arith.constant 0 : index
      %c0_14 = arith.constant 0 : index
      %24 = vector.load %arg5[%c0_13, %c0_14] : memref<1x128xf32, #tpu.memory_space<vmem>>, vector<1x128xf32>
      tpu.vector_store %arg5[%c0_13, %c0_14], %23 {strides = array<i32>} : memref<1x128xf32, #tpu.memory_space<vmem>>, vector<1x128xf32>,
    } else {
    }
    %c0 = arith.constant 0 : index
    %c0_1 = arith.constant 0 : index
    %3 = vector.load %arg5[%c0, %c0_1] : memref<1x128xf32, #tpu.memory_space<vmem>>, vector<1x128xf32>
    %c0_2 = arith.constant 0 : index
    %c0_3 = arith.constant 0 : index
    %4 = vector.load %arg2[%c0_2, %c0_3] : memref<16x128xf32, #tpu.memory_space<vmem>>, vector<16x128xf32>
    %c0_4 = arith.constant 0 : index
    %c0_5 = arith.constant 0 : index
    %5 = vector.load %arg3[%c0_4, %c0_5] : memref<16x128xf32, #tpu.memory_space<vmem>>, vector<16x128xf32>
    %cst = arith.constant 0.000000e+00 : f32
    %6 = vector.broadcast %cst : f32 to vector<16x128xf32>
    %7 = arith.maximumf %4, %6 : vector<16x128xf32>
    %8 = arith.mulf %4, %5 : vector<16x128xf32>
    %9 = arith.subf %7, %8 : vector<16x128xf32>
    %10 = math.absf %4 : vector<16x128xf32>
    %cst_6 = arith.constant 0.000000e+00 : f32
    %11 = vector.broadcast %cst_6 : f32 to vector<16x128xf32>
    %12 = arith.subf %11, %10 : vector<16x128xf32>
    %13 = math.exp %12 : vector<16x128xf32>
    %14 = math.log1p %13 : vector<16x128xf32>
    %15 = arith.addf %9, %14 : vector<16x128xf32>
    %cst_7 = arith.constant dense<0.000000e+00> : vector<128xf32>
    %16 = vector.multi_reduction <add>, %15, %cst_7 [0] : vector<16x128xf32> to vector<128xf32>
    %17 = vector.shape_cast %16 : vector<128xf32> to vector<1x128xf32>
    %18 = arith.addf %3, %17 : vector<1x128xf32>
    %c0_8 = arith.constant 0 : index
    %c0_9 = arith.constant 0 : index
    %19 = vector.load %arg5[%c0_8, %c0_9] : memref<1x128xf32, #tpu.memory_space<vmem>>, vector<1x128xf32>
    tpu.vector_store %arg5[%c0_8, %c0_9], %18 {strides = array<i32>} : memref<1x128xf32, #tpu.memory_space<vmem>>, vector<1x128xf32>,
    %c0_i32_10 = arith.constant 0 : i32
    %20 = arith.cmpi eq, %arg1, %c0_i32_10 : i32
    %21 = arith.extui %20 : i1 to i32
    %c0_i32_11 = arith.constant 0 : i32
    %22 = arith.cmpi ne, %21, %c0_i32_11 : i32
    scf.if %22 {
      %c0_12 = arith.constant 0 : index
      %c0_13 = arith.constant 0 : index
      %23 = vector.load %arg5[%c0_12, %c0_13] : memref<1x128xf32, #tpu.memory_space<vmem>>, vector<1x128xf32>
      %c0_14 = arith.constant 0 : index
      %c0_15 = arith.constant 0 : index
      %24 = vector.load %arg4[%c0_14, %c0_15] : memref<1x128xf32, #tpu.memory_space<vmem>>, vector<1x128xf32>
      tpu.vector_store %arg4[%c0_14, %c0_15], %23 {strides = array<i32>} : memref<1x128xf32, #tpu.memory_space<vmem>>, vector<1x128xf32>,
    } else {
    }
    return
  }
  func.func @transform_0(%arg0: i32, %arg1: i32) -> (i32, i32) {
    %c1_i32 = arith.constant 1 : i32
    %0 = arith.muli %arg0, %c1_i32 : i32
    %1 = arith.addi %0, %arg1 : i32
    %c0_i32 = arith.constant 0 : i32
    %2 = arith.minsi %1, %c0_i32 : i32
    %c0_i32_0 = arith.constant 0 : i32
    %c0_i32_1 = arith.constant 0 : i32
    return %2, %c0_i32_0 : i32, i32
  }
  func.func @transform_1(%arg0: i32, %arg1: i32) -> (i32, i32) {
    %c1_i32 = arith.constant 1 : i32
    %0 = arith.muli %arg0, %c1_i32 : i32
    %1 = arith.addi %0, %arg1 : i32
    %c0_i32 = arith.constant 0 : i32
    %2 = arith.minsi %1, %c0_i32 : i32
    %c0_i32_0 = arith.constant 0 : i32
    %c0_i32_1 = arith.constant 0 : i32
    return %2, %c0_i32_0 : i32, i32
  }
  func.func @transform_2(%arg0: i32, %arg1: i32) -> (i32, i32) {
    %c0_i32 = arith.constant 0 : i32
    %c0_i32_0 = arith.constant 0 : i32
    return %arg0, %c0_i32 : i32, i32
  }
}

</mosaic_0001>

<bundles_post_ra>
// kernel: tpu_custom_call.1
= control target key start
LH: loop header
LB: loop body
LE: loop exit
PB: predicated region body
PF: predicated region fallthrough
CT: control target
= control target key end

     0   :  { %7 = vsyncpa [#allocation4], 0  ;;  %s281_s0 = inlined_call_operand.hbm [shape: f32[16,128], index: 0, kind: input, shape index: {}]   ;;  %s282_s1 = inlined_call_operand.hbm [shape: f32[16,128], index: 1, kind: input, shape index: {}]   ;;  %s283_s2 = inlined_call_operand.hbm [shape: f32[1,128], index: 2, kind: output, shape index: {}]  }
   0x1   :  { %8 = vsyncpa [#allocation7], 0 }
   0x2   :  { %9 = vsyncpa [#allocation5], 0  ;;  %s224_s9 = smov [#allocation3]   ;;  %s152_s13 = scalar_lea.hbm %s281_s0, 256 }
   0x3   :  { %s21_s10 = sshll.u32 %s224_s9, 4  ;;  %p153_p0 = scmp.ne.s32.totalorder %s281_s0, %s152_s13  ;;  %s22_s10 = int_to_ptr.vmem [resolvable:$true] %s21_s10 }
   0x4   :  { %p156_p1 = scmp.lt.u32.totalorder %s152_s13, %s281_s0 }
   0x6   :  { %p158_p2 = pnand %p156_p1, %p153_p0 }
   0x8   :  { %161 = shalt.err (!%p158_p2)
}
   0x9   :  { %s162_s18 = scalar_lea.vmem %s22_s10, 256  ;;  %p167_p4 = scmp.lt.s32.totalorder %s22_s10, %s22_s10 }
   0xa   :  { %p163_p3 = scmp.ne.s32.totalorder %s22_s10, %s162_s18  ;;  %p168_p5 = scmp.lt.s32.totalorder %s162_s18, %s162_s18 }
   0xc   :  { %p169_p6 = por %p168_p5, %p167_p4 }
   0xe   :  { %p170_p7 = pnand %p169_p6, %p163_p3 }
  0x10   :  { %173 = shalt.err (!%p170_p7)
}
  0x11   :  { %s225_s19 = smov 128   ;;  %s226_s20 = smov 8  }
  0x12   :  { %27 = dma.hbm_to_vmem [thread:$0]  %s281_s0, 256, %s22_s10, [#allocation4], %s225_s19, %s225_s19, %s226_s20  }
  0x13   :  { %s227_s23 = smov [#allocation6]   ;;  %s174_s27 = scalar_lea.hbm %s282_s1, 256 }
  0x14   :  { %s39_s24 = sshll.u32 %s227_s23, 4  ;;  %p175_p8 = scmp.ne.s32.totalorder %s282_s1, %s174_s27  ;;  %s40_s24 = int_to_ptr.vmem [resolvable:$true] %s39_s24 }
  0x15   :  { %p178_p9 = scmp.lt.u32.totalorder %s174_s27, %s282_s1 }
  0x17   :  { %p180_p10 = pnand %p178_p9, %p175_p8 }
  0x19   :  { %183 = shalt.err (!%p180_p10)
}
  0x1a   :  { %s184_s4 = scalar_lea.vmem %s40_s24, 256  ;;  %p189_p12 = scmp.lt.s32.totalorder %s40_s24, %s40_s24 }
  0x1b   :  { %p185_p11 = scmp.ne.s32.totalorder %s40_s24, %s184_s4  ;;  %p190_p13 = scmp.lt.s32.totalorder %s184_s4, %s184_s4 }
  0x1d   :  { %p191_p0 = por %p190_p13, %p189_p12 }
  0x1f   :  { %p192_p1 = pnand %p191_p0, %p185_p11 }
  0x21   :  { %195 = shalt.err (!%p192_p1)
}
  0x22   :  { %45 = dma.hbm_to_vmem [thread:$0]  %s282_s1, 256, %s40_s24, [#allocation7], %s225_s19, %s225_s19, %s226_s20  }
  0x23   :  { %218 = dma.done.wait [#allocation4], 256  }
  0x24   :  { %219 = vsyncadd [#allocation4], 4294967040 }
  0x25   :  { %220 = dma.done.wait [#allocation7], 256  }
  0x26   :  { %221 = vsyncadd [#allocation7], 4294967040  ;;  %v228_v0 = vmov 0.0   ;;  %v66_v1 = vld [vmem:[#allocation3] sm:$0xff]  ;;  %v67_v2 = vld [vmem:[#allocation3 + $0x8] sm:$0xff]  ;;  %s229_s1 = smov [#allocation8]  }
  0x27   :  { %64 = vst [vmem:[#allocation2] sm:$0x1] %v228_v0  ;;  %v76_v3 = vand.u32 2147483647, %v66_v1  ;;  %v77_v4 = vand.u32 2147483647, %v67_v2 }
  0x28   :  { %v68_v15 = vld [vmem:[#allocation6] sm:$0xff]  ;;  %v69_v16 = vld [vmem:[#allocation6 + $0x8] sm:$0xff]  ;;  %v70_v18 = vmax.f32 %v66_v1, 0.0  ;;  %v71_v22 = vmax.f32 %v67_v2, 0.0  ;;  %s124_s6 = sshll.u32 %s229_s1, 4  ;;  %s125_s6 = int_to_ptr.vmem [resolvable:$true] %s124_s6 }
  0x29   :  { %v78_v5 = vsub.f32 0.0, %v76_v3  ;;  %v79_v6 = vsub.f32 0.0, %v77_v4  ;;  %v72_v19 = vmul.f32 %v68_v15, %v66_v1  ;;  %v73_v23 = vmul.f32 %v69_v16, %v67_v2  ;;  %s196_s7 = scalar_lea.vmem %s125_s6, 16  ;;  %s200_s8 = scalar_lea.vmem %s125_s6, 32 }
  0x2a   :  { %p197_p2 = scmp.ne.s32.totalorder %s125_s6, %s196_s7  ;;  %p201_p3 = scmp.lt.s32.totalorder %s125_s6, %s125_s6 }
  0x2b   :  { %v80_v7 = vmul.f32 1.442695, %v78_v5  ;;  %v82_v8 = vmul.f32 1.442695, %v79_v6  ;;  %v74_v27 = vsub.f32 %v70_v18, %v72_v19  ;;  %v75_v30 = vsub.f32 %v71_v22, %v73_v23  ;;  %p202_p4 = scmp.lt.s32.totalorder %s200_s8, %s196_s7 }
  0x2d   :  { %144 = vpow2.f32 %v80_v7  ;;  %p203_p5 = por %p202_p4, %p201_p3 }
  0x2e   :  { %146 = vpow2.f32 %v82_v8  ;;  %v65_v43 = vld [vmem:[#allocation2] sm:$0x1] }
  0x2f   :  { %p204_p6 = pnand %p203_p5, %p197_p2 }
  0x37   :  { %v145_v9 = vpop.eup %144 }
  0x38   :  { %v147_v10 = vpop.eup %146  ;;  %v84_v11 = vadd.f32 1.0, %v145_v9  ;;  %v87_v13 = vmul.f32 -0.5, %v145_v9  ;;  %v90_v20 = vand.u32 2147483647, %v145_v9 }
  0x39   :  { %v93_v12 = vadd.f32 1.0, %v147_v10  ;;  %v96_v14 = vmul.f32 -0.5, %v147_v10  ;;  %v99_v24 = vand.u32 2147483647, %v147_v10 }
  0x3a   :  { %148 = vlog2.f32 %v84_v11  ;;  %v88_v17 = vadd.f32 1.0, %v87_v13  ;;  %vm91_vm0 = vcmp.lt.f32.partialorder %v90_v20, 0.0004427343 }
  0x3b   :  { %150 = vlog2.f32 %v93_v12  ;;  %v97_v21 = vadd.f32 1.0, %v96_v14  ;;  %vm100_vm1 = vcmp.lt.f32.partialorder %v99_v24, 0.0004427343 }
  0x3c   :  { %v89_v25 = vmul.f32 %v145_v9, %v88_v17 }
  0x3d   :  { %v98_v28 = vmul.f32 %v147_v10, %v97_v21 }
  0x44   :  { %v149_v26 = vpop.eup %148 }
  0x45   :  { %v151_v29 = vpop.eup %150  ;;  %v86_v31 = vmul.f32 0.6931472, %v149_v26 }
  0x46   :  { %v95_v32 = vmul.f32 0.6931472, %v151_v29 }
  0x47   :  { %v92_v33 = vsel %vm91_vm0, %v89_v25, %v86_v31 }
  0x48   :  { %v101_v34 = vsel %vm100_vm1, %v98_v28, %v95_v32  ;;  %v102_v35 = vadd.f32 %v92_v33, %v74_v27 }
  0x49   :  { %v103_v36 = vadd.f32 %v101_v34, %v75_v30 }
  0x4b   :  { %v104_v37 = vadd.f32 %v103_v36, %v102_v35 }
  0x4d   :  { %v105_v38 = vrot.slane %v104_v37, 4 }
  0x4f   :  { %v106_v39 = vadd.f32 %v105_v38, %v104_v37 }
  0x51   :  { %v107_v40 = vrot.slane %v106_v39, 2 }
  0x53   :  { %v108_v41 = vadd.f32 %v107_v40, %v106_v39 }
  0x55   :  { %v109_v42 = vrot.slane %v108_v41, 1 }
  0x57   :  { %v110_v44 = vadd.f32 %v109_v42, %v108_v41 }
  0x59   :  { %v111_v45 = vadd.f32 %v110_v44, %v65_v43 }
  0x5b   :  { %112 = vst [vmem:[#allocation2] sm:$0x1] %v111_v45 }
  0x62   :  { %v116_v46 = vld [vmem:[#allocation2] sm:$0x1] }
  0x63   :  { %117 = vst [vmem:[#allocation8] sm:$0x1] %v116_v46 }
  0x64   :  { %207 = shalt.err (!%p204_p6)
}
  0x65   :  { %s208_s11 = scalar_lea.hbm %s283_s2, 16 }
  0x66   :  { %p209_p7 = scmp.ne.s32.totalorder %s283_s2, %s208_s11  ;;  %p212_p8 = scmp.lt.u32.totalorder %s208_s11, %s283_s2 }
  0x68   :  { %p214_p9 = pnand %p212_p8, %p209_p7 }
  0x6a   :  { %217 = shalt.err (!%p214_p9)
}
  0x6b   :  { %127 = dma.vmem_to_hbm [thread:$0]  %s125_s6, 16, %s283_s2, [#allocation5]  }
  0x6c   :  { %222 = dma.done.wait [#allocation5], 16  }
  0x6d   :  { %223 = vsyncadd [#allocation5], 4294967280 }
  0x6e   :  { %131 = vsyncpa [#allocation4], 1 }
  0x6f   :  { %132 = vsyncpa [#allocation7], 1 }
  0x70   :  { %133 = vsyncpa [#allocation5], 1 }

</bundles_post_ra>
